<compile_context>
chip_gen: v6e
topology: v6e:2x2x1
jax: 0.10.0
libtpu: 0.0.40
codegen_flags: <defaults>
</compile_context>

<pallas_src>
from functools import partial

import jax
import jax.numpy as jnp
from jax.experimental import pallas as pl
from jax.experimental.pallas import tpu as pltpu


def _round_up(v, m):
    return (v + m - 1) // m * m


def _block_kernel(z_ref, w_ref, o_ref, *, Ho, Wo, Wp, eps, negative_slope):
    # z_ref: (1, K, P4p)      bf16  space-to-depth input, flattened spatial in lanes
    # w_ref: (4, Cout, K)     bf16  one (Cout, K) matrix per 2x2 tap (dh, dw)
    # o_ref: (1, Cout, Ho*Wp) f32   channel-major output (one junk column per Wp group)
    rows = Ho * Wp
    z = z_ref[0]                                          # (K, P4p)

    # Conv as 4 shifted bf16 matmuls, f32 accumulation on the MXU.
    acc = None
    for dh in range(2):
        for dw in range(2):
            off = dh * Wp + dw                            # static lane offset
            zs = z[:, off:off + rows]                     # (K, rows)
            part = jnp.dot(w_ref[dh * 2 + dw], zs,
                           preferred_element_type=jnp.float32)   # (Cout, rows)
            acc = part if acc is None else acc + part

    # InstanceNorm2d (affine=False): per-channel stats over valid spatial positions.
    # Positions with (m % Wp) >= Wo are junk (the extra space-to-depth column).
    col = jax.lax.broadcasted_iota(jnp.int32, (1, rows), 1)
    valid = ((col % Wp) < Wo).astype(jnp.float32)         # (1, rows)
    inv_n = 1.0 / float(Ho * Wo)
    s1 = jnp.sum(acc * valid, axis=1, keepdims=True)      # (Cout, 1)
    s2 = jnp.sum(acc * acc * valid, axis=1, keepdims=True)
    mean = s1 * inv_n
    var = jnp.maximum(s2 * inv_n - mean * mean, 0.0)      # biased variance (PyTorch IN)
    y = (acc - mean) * jax.lax.rsqrt(var + eps)

    # Activation.
    if negative_slope == 0.0:
        y = jnp.maximum(y, 0.0)                           # ReLU
    else:
        y = jnp.where(y >= 0.0, y, negative_slope * y)    # LeakyReLU(0.2)

    o_ref[0] = y.astype(o_ref.dtype)                      # lane-dense channel-major store


def block_forward(x, weight, *, act="relu", use_dropout=False, eps=1e-5):
    """Forward of Block (down=True). x: (N, Cin, H, W) f32; weight: (Cout, Cin, 4, 4)."""
    N, Cin, H, W = x.shape
    Cout = weight.shape[0]
    assert H % 2 == 0 and W % 2 == 0
    Ho, Wo = H // 2, W // 2
    Hp, Wp = Ho + 1, Wo + 1                 # spatial dims of space-to-depth(padded input)
    K = 4 * Cin
    P4 = Hp * Wp
    P4p = _round_up(P4 + 1, 8)              # +1 so the (dh=1,dw=1) shifted slab stays in-bounds
    rows = Ho * Wp

    # Reflect padding=1 (PyTorch padding_mode='reflect').
    xp = jnp.pad(x, ((0, 0), (0, 0), (1, 1), (1, 1)), mode="reflect")  # (N, Cin, H+2, W+2)

    # Space-to-depth by 2 (pure layout; 1x input traffic, no im2col duplication):
    # z[n, c*4 + ph*2 + pw, r*Wp + s] = xp[n, c, 2r+ph, 2s+pw]
    z = xp.reshape(N, Cin, Hp, 2, Wp, 2)            # (n, c, r, ph, s, pw)
    z = z.transpose(0, 1, 3, 5, 2, 4)               # (n, c, ph, pw, r, s)
    z = z.reshape(N, K, P4)
    z = jnp.pad(z, ((0, 0), (0, 0), (0, P4p - P4)))
    z = z.astype(jnp.bfloat16)

    # Weight -> 4 matrices of shape (Cout, K), one per (dh, dw) tap:
    # w[dh*2+dw, o, c*4+ph*2+pw] = weight[o, c, 2*dh+ph, 2*dw+pw]
    w = weight.reshape(Cout, Cin, 2, 2, 2, 2)       # (o, c, dh, ph, dw, pw)
    w = w.transpose(2, 4, 0, 1, 3, 5)               # (dh, dw, o, c, ph, pw)
    w = w.reshape(4, Cout, K).astype(jnp.bfloat16)

    negative_slope = 0.0 if act == "relu" else 0.2

    # Explicit scoped-VMEM limit with headroom (blocks are double-buffered by Pallas).
    blk_bytes = K * P4p * 2 + 4 * Cout * K * 2 + Cout * rows * 4
    vmem_limit = int(min(max(6 * blk_bytes, 16 * 1024 * 1024), 48 * 1024 * 1024))

    out = pl.pallas_call(
        partial(_block_kernel, Ho=Ho, Wo=Wo, Wp=Wp, eps=eps,
                negative_slope=negative_slope),
        out_shape=jax.ShapeDtypeStruct((N, Cout, rows), jnp.float32),
        grid=(N,),
        in_specs=[
            pl.BlockSpec((1, K, P4p), lambda n: (n, 0, 0)),
            pl.BlockSpec((4, Cout, K), lambda n: (0, 0, 0)),
        ],
        out_specs=pl.BlockSpec((1, Cout, rows), lambda n: (n, 0, 0)),
        compiler_params=pltpu.CompilerParams(
            dimension_semantics=("parallel",),
            vmem_limit_bytes=vmem_limit,
        ),
    )(z, w)

    # TODO(synk): Dropout(0.5) path (use_dropout=True, training mode) not implemented.
    # TODO(synk): ConvTranspose2d path (down=False) not implemented.
    # TODO(synk): for production-size layers, tile the spatial axis (grid=(N, P_tiles))
    #             with resident per-channel sum/sum-sq scratch to fit v5e/v7x VMEM and
    #             use both v7x TensorCores when N is small.

    # (N, Cout, Ho*Wp) -> drop the junk column in each Wp-wide group -> NCHW.
    # Only a reshape + small slice; no HBM transpose of the output.
    return out.reshape(N, Cout, Ho, Wp)[:, :, :, :Wo]


def _reference(x, weight, *, act="relu", eps=1e-5):
    """Pure-JAX f32 reference of the same forward pass (for sanity checking)."""
    xp = jnp.pad(x, ((0, 0), (0, 0), (1, 1), (1, 1)), mode="reflect")
    y = jax.lax.conv_general_dilated(
        xp, weight, window_strides=(2, 2), padding="VALID",
        dimension_numbers=("NCHW", "OIHW", "NCHW"),
    )
    mean = jnp.mean(y, axis=(2, 3), keepdims=True)
    var = jnp.mean((y - mean) ** 2, axis=(2, 3), keepdims=True)
    y = (y - mean) / jnp.sqrt(var + eps)
    if act == "relu":
        return jnp.maximum(y, 0.0)
    return jnp.where(y >= 0.0, y, 0.2 * y)


if __name__ == "__main__":
    # Small shapes consistent with the module: N=2, Cin=4, Cout=8, H=W=16.
    N, Cin, Cout, H, W = 2, 4, 8, 16, 16

    key = jax.random.PRNGKey(0)
    kx, kw = jax.random.split(key)
    x = jax.random.normal(kx, (N, Cin, H, W), dtype=jnp.float32)
    weight = 0.1 * jax.random.normal(kw, (Cout, Cin, 4, 4), dtype=jnp.float32)

    for act in ("relu", "leaky"):
        y = jax.block_until_ready(block_forward(x, weight, act=act, use_dropout=False))
        assert y.shape == (N, Cout, H // 2, W // 2), y.shape
        y_ref = jax.block_until_ready(_reference(x, weight, act=act))
        max_err = float(jnp.max(jnp.abs(y - y_ref)))
        assert jnp.allclose(y, y_ref, atol=2e-2, rtol=2e-2), max_err

    print("KERNEL_OK")
</pallas_src>

<mosaic_0001>
module attributes {stable_mosaic.version = 11 : i64} {
  func.func @_block_kernel(%arg0: i32, %arg1: memref<1x16x88xbf16, #tpu.memory_space<vmem>>, %arg2: memref<4x8x16xbf16, #tpu.memory_space<vmem>>, %arg3: memref<1x8x72xf32, #tpu.memory_space<vmem>>) attributes {dimension_semantics = [#tpu.dimension_semantics<parallel>], iteration_bounds = array<i64: 2>, scalar_prefetch = 0 : i64, scratch_operands = 0 : i64, tpu.core_type = #tpu.core_type<tc>, window_params = [{transform_indices = @transform_0, window_bounds = array<i64: 1, 16, 88>}, {pipeline_mode = #tpu.pipeline_mode<synchronous>, transform_indices = @transform_1, window_bounds = array<i64: 4, 8, 16>}, {transform_indices = @transform_2, window_bounds = array<i64: 1, 8, 72>}]} {
    %c0 = arith.constant 0 : index
    %c0_0 = arith.constant 0 : index
    %c0_1 = arith.constant 0 : index
    %0 = vector.load %arg1[%c0, %c0_0, %c0_1] : memref<1x16x88xbf16, #tpu.memory_space<vmem>>, vector<1x16x88xbf16>
    %1 = vector.shape_cast %0 : vector<1x16x88xbf16> to vector<16x88xbf16>
    %2 = vector.extract_strided_slice %1 {offsets = [0, 0], sizes = [16, 72], strides = [1, 1]} : vector<16x88xbf16> to vector<16x72xbf16>
    %c0_2 = arith.constant 0 : index
    %c0_3 = arith.constant 0 : index
    %c0_4 = arith.constant 0 : index
    %3 = vector.load %arg2[%c0_2, %c0_3, %c0_4] : memref<4x8x16xbf16, #tpu.memory_space<vmem>>, vector<1x8x16xbf16>
    %4 = vector.shape_cast %3 : vector<1x8x16xbf16> to vector<8x16xbf16>
    %cst = arith.constant dense<0.000000e+00> : vector<8x72xf32>
    %5 = tpu.matmul %4, %2, %cst {dimension_numbers = #tpu.dot_dimension_numbers<[1], [0], [0], [1], [0, 0, 1, 1], [], []>} : vector<8x16xbf16>, vector<16x72xbf16>, vector<8x72xf32> -> vector<8x72xf32>
    %6 = vector.extract_strided_slice %1 {offsets = [0, 1], sizes = [16, 72], strides = [1, 1]} : vector<16x88xbf16> to vector<16x72xbf16>
    %c1 = arith.constant 1 : index
    %c0_5 = arith.constant 0 : index
    %c0_6 = arith.constant 0 : index
    %7 = vector.load %arg2[%c1, %c0_5, %c0_6] : memref<4x8x16xbf16, #tpu.memory_space<vmem>>, vector<1x8x16xbf16>
    %8 = vector.shape_cast %7 : vector<1x8x16xbf16> to vector<8x16xbf16>
    %cst_7 = arith.constant dense<0.000000e+00> : vector<8x72xf32>
    %9 = tpu.matmul %8, %6, %cst_7 {dimension_numbers = #tpu.dot_dimension_numbers<[1], [0], [0], [1], [0, 0, 1, 1], [], []>} : vector<8x16xbf16>, vector<16x72xbf16>, vector<8x72xf32> -> vector<8x72xf32>
    %10 = arith.addf %5, %9 : vector<8x72xf32>
    %11 = vector.extract_strided_slice %1 {offsets = [0, 9], sizes = [16, 72], strides = [1, 1]} : vector<16x88xbf16> to vector<16x72xbf16>
    %c2 = arith.constant 2 : index
    %c0_8 = arith.constant 0 : index
    %c0_9 = arith.constant 0 : index
    %12 = vector.load %arg2[%c2, %c0_8, %c0_9] : memref<4x8x16xbf16, #tpu.memory_space<vmem>>, vector<1x8x16xbf16>
    %13 = vector.shape_cast %12 : vector<1x8x16xbf16> to vector<8x16xbf16>
    %cst_10 = arith.constant dense<0.000000e+00> : vector<8x72xf32>
    %14 = tpu.matmul %13, %11, %cst_10 {dimension_numbers = #tpu.dot_dimension_numbers<[1], [0], [0], [1], [0, 0, 1, 1], [], []>} : vector<8x16xbf16>, vector<16x72xbf16>, vector<8x72xf32> -> vector<8x72xf32>
    %15 = arith.addf %10, %14 : vector<8x72xf32>
    %16 = vector.extract_strided_slice %1 {offsets = [0, 10], sizes = [16, 72], strides = [1, 1]} : vector<16x88xbf16> to vector<16x72xbf16>
    %c3 = arith.constant 3 : index
    %c0_11 = arith.constant 0 : index
    %c0_12 = arith.constant 0 : index
    %17 = vector.load %arg2[%c3, %c0_11, %c0_12] : memref<4x8x16xbf16, #tpu.memory_space<vmem>>, vector<1x8x16xbf16>
    %18 = vector.shape_cast %17 : vector<1x8x16xbf16> to vector<8x16xbf16>
    %cst_13 = arith.constant dense<0.000000e+00> : vector<8x72xf32>
    %19 = tpu.matmul %18, %16, %cst_13 {dimension_numbers = #tpu.dot_dimension_numbers<[1], [0], [0], [1], [0, 0, 1, 1], [], []>} : vector<8x16xbf16>, vector<16x72xbf16>, vector<8x72xf32> -> vector<8x72xf32>
    %20 = arith.addf %15, %19 : vector<8x72xf32>
    %21 = tpu.iota {dimensions = array<i32: 1>} : vector<1x72xi32>
    %c9_i32 = arith.constant 9 : i32
    %c0_i32 = arith.constant 0 : i32
    %22 = arith.cmpi eq, %c9_i32, %c0_i32 : i32
    %c1_i32 = arith.constant 1 : i32
    %23 = arith.select %22, %c1_i32, %c9_i32 : i32
    %24 = vector.broadcast %23 : i32 to vector<1x72xi32>
    %25 = arith.remsi %21, %24 : vector<1x72xi32>
    %c0_i32_14 = arith.constant 0 : i32
    %26 = vector.broadcast %c0_i32_14 : i32 to vector<1x72xi32>
    %27 = arith.cmpi ne, %25, %26 : vector<1x72xi32>
    %c0_i32_15 = arith.constant 0 : i32
    %28 = vector.broadcast %c0_i32_15 : i32 to vector<1x72xi32>
    %29 = arith.cmpi slt, %25, %28 : vector<1x72xi32>
    %c0_i32_16 = arith.constant 0 : i32
    %30 = arith.cmpi slt, %23, %c0_i32_16 : i32
    %31 = vector.broadcast %30 : i1 to vector<1x72xi1>
    %32 = vector.broadcast %31 : vector<1x72xi1> to vector<1x72xi1>
    %33 = arith.xori %29, %32 : vector<1x72xi1>
    %34 = arith.andi %33, %27 : vector<1x72xi1>
    %35 = vector.broadcast %23 : i32 to vector<1x72xi32>
    %36 = arith.addi %25, %35 : vector<1x72xi32>
    %37 = arith.select %34, %36, %25 : vector<1x72xi1>, vector<1x72xi32>
    %c8_i32 = arith.constant 8 : i32
    %38 = vector.broadcast %c8_i32 : i32 to vector<1x72xi32>
    %39 = arith.cmpi slt, %37, %38 : vector<1x72xi32>
    %40 = arith.extui %39 : vector<1x72xi1> to vector<1x72xi32>
    %41 = arith.sitofp %40 : vector<1x72xi32> to vector<1x72xf32>
    %42 = vector.broadcast %41 : vector<1x72xf32> to vector<8x72xf32>
    %43 = arith.mulf %20, %42 : vector<8x72xf32>
    %cst_17 = arith.constant dense<0.000000e+00> : vector<8xf32>
    %44 = vector.multi_reduction <add>, %43, %cst_17 [1] : vector<8x72xf32> to vector<8xf32>
    %45 = vector.shape_cast %44 : vector<8xf32> to vector<8x1xf32>
    %46 = arith.mulf %20, %20 : vector<8x72xf32>
    %47 = vector.broadcast %41 : vector<1x72xf32> to vector<8x72xf32>
    %48 = arith.mulf %46, %47 : vector<8x72xf32>
    %cst_18 = arith.constant dense<0.000000e+00> : vector<8xf32>
    %49 = vector.multi_reduction <add>, %48, %cst_18 [1] : vector<8x72xf32> to vector<8xf32>
    %50 = vector.shape_cast %49 : vector<8xf32> to vector<8x1xf32>
    %cst_19 = arith.constant 1.562500e-02 : f32
    %51 = vector.broadcast %cst_19 : f32 to vector<8x1xf32>
    %52 = arith.mulf %45, %51 : vector<8x1xf32>
    %cst_20 = arith.constant 1.562500e-02 : f32
    %53 = vector.broadcast %cst_20 : f32 to vector<8x1xf32>
    %54 = arith.mulf %50, %53 : vector<8x1xf32>
    %55 = arith.mulf %52, %52 : vector<8x1xf32>
    %56 = arith.subf %54, %55 : vector<8x1xf32>
    %cst_21 = arith.constant 0.000000e+00 : f32
    %57 = vector.broadcast %cst_21 : f32 to vector<8x1xf32>
    %58 = arith.maximumf %56, %57 : vector<8x1xf32>
    %59 = vector.broadcast %52 : vector<8x1xf32> to vector<8x72xf32>
    %60 = arith.subf %20, %59 : vector<8x72xf32>
    %cst_22 = arith.constant 9.99999974E-6 : f32
    %61 = vector.broadcast %cst_22 : f32 to vector<8x1xf32>
    %62 = arith.addf %58, %61 : vector<8x1xf32>
    %63 = math.rsqrt %62 : vector<8x1xf32>
    %64 = vector.broadcast %63 : vector<8x1xf32> to vector<8x72xf32>
    %65 = arith.mulf %60, %64 : vector<8x72xf32>
    %cst_23 = arith.constant 0.000000e+00 : f32
    %66 = vector.broadcast %cst_23 : f32 to vector<8x72xf32>
    %67 = arith.maximumf %65, %66 : vector<8x72xf32>
    %c0_24 = arith.constant 0 : index
    %c0_25 = arith.constant 0 : index
    %c0_26 = arith.constant 0 : index
    %68 = vector.load %arg3[%c0_24, %c0_25, %c0_26] : memref<1x8x72xf32, #tpu.memory_space<vmem>>, vector<1x8x72xf32>
    %69 = vector.shape_cast %68 : vector<1x8x72xf32> to vector<8x72xf32>
    %70 = vector.shape_cast %67 : vector<8x72xf32> to vector<1x8x72xf32>
    tpu.vector_store %arg3[%c0_24, %c0_25, %c0_26], %70 {strides = array<i32>} : memref<1x8x72xf32, #tpu.memory_space<vmem>>, vector<1x8x72xf32>,
    return
  }
  func.func @transform_0(%arg0: i32) -> (i32, i32, i32) {
    %c0_i32 = arith.constant 0 : i32
    %c0_i32_0 = arith.constant 0 : i32
    %c0_i32_1 = arith.constant 0 : i32
    return %arg0, %c0_i32, %c0_i32_0 : i32, i32, i32
  }
  func.func @transform_1(%arg0: i32) -> (i32, i32, i32) {
    %c0_i32 = arith.constant 0 : i32
    %c0_i32_0 = arith.constant 0 : i32
    %c0_i32_1 = arith.constant 0 : i32
    %c0_i32_2 = arith.constant 0 : i32
    return %c0_i32, %c0_i32_0, %c0_i32_1 : i32, i32, i32
  }
  func.func @transform_2(%arg0: i32) -> (i32, i32, i32) {
    %c0_i32 = arith.constant 0 : i32
    %c0_i32_0 = arith.constant 0 : i32
    %c0_i32_1 = arith.constant 0 : i32
    return %arg0, %c0_i32, %c0_i32_0 : i32, i32, i32
  }
}

</mosaic_0001>

<bundles_post_ra>
// kernel: tpu_custom_call.1
= control target key start
LH: loop header
LB: loop body
LE: loop exit
PB: predicated region body
PF: predicated region fallthrough
CT: control target
= control target key end

     0   :  { %7 = vsyncpa [#allocation3], 0  ;;  %s973_s0 = inlined_call_operand.hbm [shape: bf16[2,16,88], index: 0, kind: input, shape index: {}]   ;;  %s974_s1 = inlined_call_operand.hbm [shape: bf16[4,8,16], index: 1, kind: input, shape index: {}]   ;;  %s975_s2 = inlined_call_operand.hbm [shape: f32[2,8,72], index: 2, kind: output, shape index: {}]  }
   0x1   :  { %9 = vsyncpa [#allocation3 + $0x1], 0 }
   0x2   :  { %10 = vsyncpa [#allocation6], 0 }
   0x3   :  { %11 = vsyncpa [#allocation4], 0 }
   0x4   :  { %13 = vsyncpa [#allocation4 + $0x1], 0  ;;  %s785_s9 = smov 0   ;;  %s787_s10 = smov 0  }
   0x5   :  { %s789_s11 = smov 0   ;;  %s791_s12 = smov 0  }
   0x6 LB: > { %s806_s13 = sadd.s32 4294967295, %s758_s12   ;;  %s513_s14 = sadd.s32 4294967294, %s758_s12   ;;  %s758_s12 = sphi %s791_s12, %s997_s12   ;;  %s754_s11 = sphi %s789_s11, %s996_s11   ;;  %s750_s10 = sphi %s787_s10, %s995_s10   ;;  %s746_s9 = sphi %s785_s9, %s994_s9  }
   0x7   : > { %p39_p0 = scmp.ne.s32.totalorder %s750_s10, %s746_s9  ;;  %p976_p1 = scmp.eq.s32.totalorder %s806_s13, 0 }
   0x8   : > { %p90_p3 = scmp.eq.s32.totalorder %s513_s14, 1  ;;  %p514_p5 = scmp.ge.s32.totalorder %s758_s12, 1 }
   0x9   : > { %p815_p4 = por %p976_p1, %p39_p0  ;;  %p97_p7 = scmp.lt.s32.totalorder %s758_s12, 3 }
   0xa   : > { %p820_p6 = por %p90_p3, %p39_p0  ;;  %s760_s18 = smov [#allocation5]  }
   0xb   : > { %s980_s15 = scalar_select %p815_p4, 1, 0 }
   0xc   : > { %s981_s16 = scalar_select %p820_p6, 1, 0 }
   0xd   : > { %p825_p8 = pnand %p514_p5, %p97_p7  ;;  %s109_s19 = sshll.u32 %s760_s18, 4  ;;  %s110_s19 = int_to_ptr.vmem [resolvable:$true] %s109_s19 }
   0xe   : > { %s839_s21 = sadd.s32 1, %s758_s12   ;;  %s26_s22 = sadd.s32 1, %s754_s11 }
   0xf   : > { %s982_s17 = scalar_select %p825_p8, 1, 0 }
  0x10   : > { %p577_p9 = pneg %p825_p8  ;;  %s23_s23 = ssub.s32 %s758_s12, %s839_s21 }
  0x11   : > { %s647_s24 = scalar_lea.vmem %s110_s19, 256  ;;  %p655_p5 = scmp.lt.s32.totalorder %s110_s19, %s110_s19 }
  0x12   : > { %p834_p11 = pnand %p577_p9, %p976_p1  ;;  %p648_p13 = scmp.ne.s32.totalorder %s110_s19, %s647_s24 }
  0x13   : > { %p656_p7 = scmp.lt.s32.totalorder %s647_s24, %s647_s24 }
  0x14   : > { %p638_p12 = pneg %p834_p11 }
  0x15   : > { %p657_p10 = por %p656_p7, %p655_p5 }
  0x16   : > { %p650_p0 = pnand %p648_p13, %p638_p12 }
  0x18   : > { %p651_p3 = pneg %p650_p0 }
  0x1a   : > { %p658_p2 = pnand %p657_p10, %p651_p3 }
  0x1c   : > { %661 = shalt.err (!%p658_p2)
}
  0x1d   : > { %s761_s25 = smov 64   ;;  %s762_s26 = smov 4  }
  0x1e   : > { %580 = dma.hbm_to_vmem [thread:$0]  (!%p834_p11), %s974_s1, 256, %s110_s19, [#allocation6], %s761_s25, %s761_s25, %s762_s26  }
  0x1f   : > { %p24_p2 = scmp.eq.s32.totalorder %s23_s23, 0  ;;  %p33_p9 = scmp.ne.s32.totalorder %s754_s11, %s750_s10 }
  0x20   : > { %p34_p10 = scmp.eq.s32.totalorder %s758_s12, 0  ;;  %p590_p12 = scmp.lt.s32.totalorder %s758_s12, 2 }
  0x21   : > { %s859_s29 = scalar_select %p24_p2, %s754_s11, %s26_s22  }
  0x22   : > { %p35_p13 = por %p34_p10, %p33_p9  ;;  %p984_p0 = scmp.eq.s32.totalorder %s806_s13, 1 }
  0x23   : > { %s123_s3 = sand.u32 1, %s754_s11   ;;  %s534_s4 = sshll.u32 %s758_s12, 7 }
  0x24   : > { %p863_p3 = por %p984_p0, %p33_p9  ;;  %s517_s5 = sshll.u32 %s123_s3, 3 }
  0x25   : > { %s872_s8 = scalar_lea.hbm %s973_s0, %s534_s4  ;;  %s127_s14 = scalar_lea.vmem [#allocation2], %s517_s5 }
  0x26   : > { %s985_s30 = scalar_select %p863_p3, 1, 0 }
  0x27   : > { %s134_s18 = sshll.u32 %s127_s14, 4  ;;  %p874_p11 = pnand %p590_p12, %p35_p13  ;;  %s878_s18 = int_to_ptr.vmem [resolvable:$true] %s134_s18 }
  0x28   : > { %s880_s20 = scalar_lea.sflag [#allocation3], %s123_s3  ;;  %s662_s22 = scalar_lea.hbm %s872_s8, 128 }
  0x29   : > { %p663_p5 = scmp.ne.s32.totalorder %s872_s8, %s662_s22  ;;  %p664_p7 = pneg %p874_p11 }
  0x2a   : > { %s667_s27 = scalar_lea.hbm %s973_s0, 256  ;;  %p668_p10 = scmp.lt.s32.totalorder %s872_s8, %s973_s0 }
  0x2b   : > { %p665_p2 = pnand %p664_p7, %p663_p5  ;;  %p669_p12 = scmp.lt.s32.totalorder %s667_s27, %s662_s22 }
  0x2d   : > { %p666_p9 = pneg %p665_p2  ;;  %p670_p13 = por %p669_p12, %p668_p10 }
  0x2f   : > { %p671_p0 = pnand %p670_p13, %p666_p9 }
  0x31   : > { %674 = shalt.err (!%p671_p0)
}
  0x32   : > { %s675_s3 = scalar_lea.vmem %s878_s18, 128  ;;  %s763_s5 = smov [#allocation2]  }
  0x33   : > { %p676_p1 = scmp.ne.s32.totalorder %s878_s18, %s675_s3  ;;  %s680_s6 = sshll.u32 %s763_s5, 4  ;;  %s681_s6 = int_to_ptr.vmem [resolvable:$false] %s680_s6 }
  0x34   : > { %s682_s7 = scalar_lea.vmem %s681_s6, 256  ;;  %p683_p2 = scmp.lt.s32.totalorder %s878_s18, %s681_s6 }
  0x35   : > { %p678_p6 = pnand %p676_p1, %p664_p7  ;;  %p684_p3 = scmp.lt.s32.totalorder %s682_s7, %s675_s3 }
  0x37   : > { %p679_p5 = pneg %p678_p6  ;;  %p685_p4 = por %p684_p3, %p683_p2 }
  0x39   : > { %p686_p8 = pnand %p685_p4, %p679_p5 }
  0x3b   : > { %689 = shalt.err (!%p686_p8)
}
  0x3c   : > { %584 = dma.hbm_to_vmem [thread:$0]  (!%p874_p11), %s872_s8, 128, %s878_s18, %s880_s20, %s761_s25, %s761_s25, %s762_s26  }
  0x3d   : > { %p987_p1 = scmp.ne.s32.totalorder %s982_s17, 0 }
  0x3e   : > { %s907_s14 = sand.u32 (!%p987_p1), 1, %s750_s10   ;;  %p988_p4 = scmp.ne.s32.totalorder (!%p987_p1), %s980_s15, 0 }
  0x3f   : > { %146 = sbr.rel (%p987_p1) target bundleno = 580 (0x244), region = 28  ;;  %s521_s22 = sshll.u32 (!%p987_p1), %s907_s14, 3 }
  0x40   : > { %s149_s23 = scalar_lea.sflag (!%p987_p1), [#allocation3], %s907_s14  ;;  %s152_s19 = scalar_lea.vmem (!%p987_p1), [#allocation2], %s521_s22 }
  0x44   : > { %733 = dma.done.wait (%p988_p4), %s149_s23, 128  }
  0x45   : > { %735 = vsyncadd (%p988_p4), %s149_s23, 4294967168  ;;  %p989_p6 = scmp.eq.s32.totalorder %s806_s13, 0 }
  0x47   : > { %737 = dma.done.wait (%p989_p6), [#allocation6], 256   ;;  %p990_p8 = pmov %p989_p6 }
  0x48   : > { %v764_v0 = vmov 0.0   ;;  %vm765_vm0 = vmmov 0   ;;  %v633_v1 = vld [vmem:[%s152_s19] sm:$0xff]   ;;  %s766_s17 = smov 127   ;;  %s767_s25 = smov 118   ;;  %vm191_vm1 = vcmask 130048   ;;  %v377_v13 = vlaneseq }
  0x49   : > { %739 = vsyncadd (%p990_p8), [#allocation6], 4294967040  ;;  %549 = vmatprep.subr.bf16.mxu1 %v764_v0  ;;  %543 = vmatprep.subr.bf16.mxu0 %v764_v0  ;;  %v180_v2 = vld [vmem:[#allocation5] sm:$0xf]  ;;  %s768_s15 = smov 119   ;;  %vm399_vm6 = vcmask 588800  }
  0x4a   : > { %551 = vmatprep.mubr.msk.bf16.mxu1 %vm765_vm0, %v764_v0  ;;  %545 = vmatprep.mubr.msk.bf16.mxu0 %vm765_vm0, %v764_v0  ;;  %v182_v5 = vld [vmem:[#allocation5 + $0x4] sm:$0xf]  ;;  %v329_v6 = vld [vmem:[#allocation5 + $0xc] sm:$0xf]  ;;  %v280_v8 = vld [vmem:[#allocation5 + $0x8] sm:$0xf] }
  0x4b   : > { %188 = vrot.lane.b32.xlu0 %v633_v1, %s766_s17  ;;  %330 = vrot.lane.b32.xlu1 %v633_v1, %s767_s25  ;;  %v378_v14 = vand.u32 127, %v377_v13  ;;  %s531_s26 = sshll.u32 %s806_s13, 7  ;;  %s176_s8 = scalar_lea.vmem [#allocation7], %s521_s22 }
  0x4c   : > { %550 = vmatpush3.bf16.msra.mxu1 %v633_v1  ;;  %s433_s18 = sshll.u32 %s176_s8, 4  ;;  %s431_s27 = scalar_lea.hbm %s975_s2, %s531_s26  ;;  %s434_s18 = int_to_ptr.vmem [resolvable:$true] %s433_s18 }
  0x4d   : > { %561 = vmatprep.subr.bf16.mxu1 %v764_v0  ;;  %v929_v15 = vmul.u32.u64.low 3817748708, %v378_v14  ;;  %v930_v16 = vmul.u32.u64.high 3817748708, %v378_v14, %v929_v15  ;;  %s420_s28 = scalar_lea.sflag [#allocation4], %s907_s14  ;;  %s690_s4 = scalar_lea.vmem %s434_s18, 128 }
  0x4e   : > { %p691_p3 = scmp.ne.s32.totalorder %s434_s18, %s690_s4  ;;  %p991_p11 = scmp.ne.s32.totalorder %s985_s30, 0 }
  0x4f   : > { %281 = vrot.lane.b32.xlu0 %v633_v1, %s768_s15  ;;  %552 = vmatmul.mubr.msk.bf16.vlgmr.msra.gmra.mxu1 %vm191_vm1, %v180_v2  ;;  %v385_v17 = vshrl.u32 %v930_v16, 3  ;;  %s769_s3 = smov [#allocation7]  }
  0x50   : > { %563 = vmatprep.mubr.msk.bf16.mxu1 %vm765_vm0, %v764_v0  ;;  %p692_p7 = pnand %p691_p3, %p991_p11  ;;  %s694_s13 = sshll.u32 %s769_s3, 4  ;;  %s695_s13 = int_to_ptr.vmem [resolvable:$false] %s694_s13 }
  0x51   : > { %v386_v18 = vmul.u32 9, %v385_v17  ;;  %s696_s5 = scalar_lea.vmem %s695_s13, 256  ;;  %p697_p10 = scmp.lt.s32.totalorder %s434_s18, %s695_s13 }
  0x52   : > { %p693_p9 = pneg %p692_p7  ;;  %p698_p12 = scmp.lt.s32.totalorder %s696_s5, %s690_s4 }
  0x53   : > { %v387_v19 = vsub.s32 %v378_v14, %v386_v18 }
  0x54   : > { %p699_p13 = por %p698_p12, %p697_p10 }
  0x55   : > { %vm390_vm2 = vcmp.ne.s32.totalorder %v387_v19, 0  ;;  %vm391_vm3 = vcmp.lt.s32.totalorder %v387_v19, 0  ;;  %v393_v22 = vadd.s32 9, %v387_v19 }
  0x56   : > { %vm392_vm4 = vmand %vm391_vm3, %vm390_vm2  ;;  %p700_p0 = pnand %p699_p13, %p693_p9 }
  0x57   : > { %v394_v27 = vsel %vm392_vm4, %v393_v22, %v387_v19 }
  0x58   : > { %vm395_vm5 = vcmp.lt.s32.totalorder %v394_v27, 8 }
  0x59   : > { %v529_v34 = vsel %vm395_vm5, 1.0, %v764_v0 }
  0xbd   : > { %v189_v3 = vpop.permute.xlu0 %188  ;;  %v331_v4 = vpop.permute.xlu1 %330 }
  0xbe   : > { %544 = vmatpush3.bf16.msra.mxu0 %v189_v3  ;;  %562 = vmatpush3.bf16.msra.mxu1 %v331_v4 }
  0xbf   : > { %555 = vmatprep.subr.bf16.mxu0 %v764_v0 }
  0xc1   : > { %546 = vmatmul.mubr.msk.bf16.vlgmr.msra.gmra.mxu0 %vm191_vm1, %v182_v5  ;;  %v282_v7 = vpop.permute.xlu0 %281  ;;  %564 = vmatmul.mubr.msk.bf16.vlgmr.msra.gmra.mxu1 %vm191_vm1, %v329_v6 }
  0xc2   : > { %556 = vmatpush3.bf16.msra.mxu0 %v282_v7  ;;  %557 = vmatprep.mubr.msk.bf16.mxu0 %vm765_vm0, %v764_v0 }
  0xc9   : > { %558 = vmatmul.mubr.msk.bf16.vlgmr.msra.gmra.mxu0 %vm191_vm1, %v280_v8 }
 0x10f   : > { %v273_v9 = vpop.f32.mrf.mxu1 }
 0x111   : > { %v553_v10 = vpop.f32.mrf.mxu1 }
 0x113   : > { %v276_v11 = vpop.f32.mrf.mxu1 }
 0x115   : > { %v554_v12 = vpop.f32.mrf.mxu1 }
 0x181   : > { %v229_v20 = vpop.f32.mrf.mxu0  ;;  %v370_v21 = vpop.f32.mrf.mxu1 }
 0x182   : > { %v274_v30 = vadd.f32 %v273_v9, %v229_v20 }
 0x183   : > { %v547_v23 = vpop.f32.mrf.mxu0  ;;  %v565_v24 = vpop.f32.mrf.mxu1 }
 0x185   : > { %v232_v25 = vpop.f32.mrf.mxu0  ;;  %v373_v26 = vpop.f32.mrf.mxu1 }
 0x187   : > { %v548_v28 = vpop.f32.mrf.mxu0  ;;  %v566_v29 = vpop.f32.mrf.mxu1 }
 0x189   : > { %v321_v31 = vpop.f32.mrf.mxu0 }
 0x18a   : > { %v327_v32 = vadd.f32 %v321_v31, %v274_v30 }
 0x18b   : > { %v559_v33 = vpop.f32.mrf.mxu0 }
 0x18c   : > { %v376_v35 = vadd.f32 %v370_v21, %v327_v32 }
 0x18d   : > { %v324_v36 = vpop.f32.mrf.mxu0 }
 0x18e   : > { %v398_v37 = vmul.f32 %v529_v34, %v376_v35  ;;  %v403_v38 = vmul.f32 %v376_v35, %v376_v35 }
 0x18f   : > { %v560_v39 = vpop.f32.mrf.mxu0 }
 0x190   : > { %v400_v40 = vsel %vm399_vm6, %v398_v37, 0.0  ;;  %v404_v41 = vmul.f32 %v529_v34, %v403_v38 }
 0x191   : > { %401 = vadd.xlane.f32.xlu1 %v400_v40 }
 0x192   : > { %v405_v42 = vsel %vm399_vm6, %v404_v41, 0.0 }
 0x193   : > { %406 = vadd.xlane.f32.xlu0 %v405_v42 }
 0x21a   : > { %v402_v43 = vpop.xlane.xlu1 %401 }
 0x21b   : > { %v408_v44 = vmul.f32 0.015625, %v402_v43 }
 0x21c   : > { %v407_v45 = vpop.xlane.xlu0 %406 }
 0x21d   : > { %v410_v46 = vmul.f32 %v408_v44, %v408_v44  ;;  %v409_v47 = vmul.f32 0.015625, %v407_v45  ;;  %v413_v51 = vsub.f32 %v376_v35, %v408_v44 }
 0x21f   : > { %v411_v48 = vsub.f32 %v409_v47, %v410_v46 }
 0x221   : > { %v412_v49 = vmax.f32 %v411_v48, 0.0 }
 0x223   : > { %v414_v50 = vadd.f32 1e-05, %v412_v49 }
 0x225   : > { %634 = vrsqrt.f32 %v414_v50 }
 0x232   : > { %v635_v52 = vpop.eup %634 }
 0x233   : > { %v416_v53 = vmul.f32 %v635_v52, %v413_v51 }
 0x235   : > { %v417_v54 = vmax.f32 %v416_v53, 0.0 }
 0x237   : > { %418 = vst.msk [vmem:[%s176_s8] sm:$0xff] %vm399_vm6, %v417_v54 }
 0x238   : > { %703 = shalt.err (!%p700_p0)
}
 0x239   : > { %s704_s6 = scalar_lea.hbm %s431_s27, 128  ;;  %s708_s22 = scalar_lea.hbm %s975_s2, 256 }
 0x23a   : > { %p705_p5 = scmp.ne.s32.totalorder %s431_s27, %s704_s6  ;;  %p709_p4 = scmp.lt.s32.totalorder %s431_s27, %s975_s2 }
 0x23b   : > { %p710_p6 = scmp.lt.s32.totalorder %s708_s22, %s704_s6 }
 0x23c   : > { %p706_p2 = pnand %p705_p5, %p991_p11 }
 0x23d   : > { %p711_p8 = por %p710_p6, %p709_p4 }
 0x23e   : > { %p707_p1 = pneg %p706_p2 }
 0x240   : > { %p712_p3 = pnand %p711_p8, %p707_p1 }
 0x242   : > { %715 = shalt.err (!%p712_p3)
}
 0x243   : > { %575 = dma.vmem_to_hbm [thread:$0]  (%p991_p11), %s434_s18, 128, %s431_s27, %s420_s28  }
 0x244 PF: > { %s445_s17 = sand.u32 1, %s746_s9   ;;  %p992_p7 = scmp.ne.s32.totalorder %s981_s16, 0 }
 0x245   : > { %p993_p9 = scmp.ge.s32.totalorder %s758_s12, 2  ;;  %s446_s25 = scalar_lea.sflag [#allocation4], %s445_s17 }
 0x247   : > { %p586_p10 = pnand %p993_p9, %p992_p7 }
 0x249   : > { %p587_p12 = pneg %p586_p10 }
 0x24b   : > { %741 = dma.done.wait (%p587_p12), %s446_s25, 128  }
 0x24c   : > { %743 = vsyncadd (%p587_p12), %s446_s25, 4294967168  ;;  %p16_p13 = scmp.ge.s32.totalorder %s839_s21, 4   ;;  %s994_s9 = smov %s750_s10 }
 0x24d   : > { %s995_s10 = smov %s754_s11  ;;  %s996_s11 = smov %s859_s29 }
 0x24e   : > { %s997_s12 = smov %s839_s21  ;;  %18 = sbr.rel (!%p16_p13) target bundleno = 6 (0x6), region = 80 }
 0x253   :  { %451 = vsyncpa [#allocation3], 1 }
 0x254   :  { %453 = vsyncpa [#allocation3 + $0x1], 1 }
 0x255   :  { %454 = vsyncpa [#allocation6], 1 }
 0x256   :  { %455 = vsyncpa [#allocation4], 1 }
 0x257   :  { %457 = vsyncpa [#allocation4 + $0x1], 1 }

</bundles_post_ra>
